<compile_context>
chip_gen: v7x
topology: tpu7x:2x2x1
jax: 0.10.0
libtpu: 0.0.40
codegen_flags: <defaults>
</compile_context>

<pallas_src>
import jax
import jax.numpy as jnp
from jax.experimental import pallas as pl
from jax.experimental.pallas import tpu as pltpu

LN_EPS = 1e-5          # torch.nn.LayerNorm default


# ---------------------------------------------------------------------------
# Generation-aware planning helpers
# ---------------------------------------------------------------------------
def _is_v7x():
    kind = jax.devices()[0].device_kind.lower()
    return ("v7" in kind) or ("7x" in kind)


def _dim_semantics(n_axes):
    """All axes data-parallel; on v7x make the leading axis CORE_PARALLEL so the
    grid is actually sharded across both TensorCores (plain 'parallel' does not)."""
    if _is_v7x():
        return (pltpu.CORE_PARALLEL,) + (pltpu.PARALLEL,) * (n_axes - 1)
    return ("parallel",) * n_axes


def _tile_plan(B, S, H, itemsize):
    """Pick (tb, ts, vmem_limit_bytes) for the add+LN kernel.

    VMEM/step for the tiles = (x + out) * double-buffer = 4 * tb*ts*H*itemsize.
    v7x: keep under ~20 MiB (64 MiB physical / 32 MiB default scoped VMEM).
    v5e/v6e: 128 MiB physical -> raise scoped limit to 64 MiB and use bigger
    tiles (halves the ~0.35 us/step grid overhead)."""
    if _is_v7x():
        rows_target, tile_budget, vmem_limit = 1024, 20 * 1024 * 1024, None
    else:
        rows_target, tile_budget, vmem_limit = 2048, 48 * 1024 * 1024, 64 * 1024 * 1024
    max_rows = max(8, tile_budget // (4 * H * itemsize))
    rows = min(rows_target, max_rows)
    if S <= rows:
        ts = S                                   # full seq per tile
        tb = max(1, min(B, rows // S))
    else:
        tb = 1                                   # long sequence: tile S instead
        ts = min(S, max(8, (rows // 8) * 8))     # keep sublane-aligned
    return tb, ts, vmem_limit


# ---------------------------------------------------------------------------
# Kernel 1: fused add + LayerNorm  (Dropout omitted: eval/inference -> identity)
#   x_ref   : (TB, TS, H) bf16 tile of the word(+type) embeddings
#   pos_ref : (TS, H) f32  precomputed tanh(pos_emb @ W^T + b)  (broadcast over TB)
#   gamma/beta : (1, H) f32 LayerNorm affine parameters
# ---------------------------------------------------------------------------
def embed_ln_kernel(x_ref, pos_ref, gamma_ref, beta_ref, o_ref):
    # bf16 I/O, f32 math (v5e has no bf16 VPU; the upcast is required anyway).
    e = x_ref[...].astype(jnp.float32) + pos_ref[...]           # broadcast over TB
    mean = jnp.mean(e, axis=-1, keepdims=True)
    ex2 = jnp.mean(e * e, axis=-1, keepdims=True)
    var = jnp.maximum(ex2 - mean * mean, 0.0)    # clamp single-sweep cancellation
    normed = (e - mean) * jax.lax.rsqrt(var + LN_EPS)
    out = normed * gamma_ref[...] + beta_ref[...]
    # TODO(synk): nn.Dropout omitted (eval/inference mode -> identity).
    o_ref[...] = out.astype(o_ref.dtype)


def positional_embedding_forward(x, pos_table, w, b, gamma, beta):
    """x: (B, S, H) embeddings (bf16 recommended); pos_table: (max_len, H);
    w: (H, H) Linear weight (out, in); b/gamma/beta: (H,).
    Returns LayerNorm(x + tanh(pos_emb @ W^T + b)) with dtype of x."""
    B, S, H = x.shape
    # Hoisted one-shot computation (tiny matmul; never re-run per grid step).
    pos_lin = jnp.tanh(
        jnp.dot(pos_table[:S], w.T, preferred_element_type=jnp.float32) + b
    ).astype(jnp.float32)                                        # (S, H)

    tb, ts, vmem_limit = _tile_plan(B, S, H, x.dtype.itemsize)
    grid = (pl.cdiv(B, tb), pl.cdiv(S, ts))

    return pl.pallas_call(
        embed_ln_kernel,
        out_shape=jax.ShapeDtypeStruct((B, S, H), x.dtype),
        grid=grid,
        in_specs=[
            # Sweep pipeline_mode=pl.Buffered(3) here if xprof shows exposed DMA
            # (each extra buffer adds tb*ts*H*itemsize bytes to the VMEM budget).
            pl.BlockSpec((tb, ts, H), lambda i, j: (i, j, 0)),   # x tile
            pl.BlockSpec((ts, H), lambda i, j: (j, 0)),          # pos_lin (seq tile)
            pl.BlockSpec((1, H), lambda i, j: (0, 0)),           # LN gamma (resident)
            pl.BlockSpec((1, H), lambda i, j: (0, 0)),           # LN beta  (resident)
        ],
        out_specs=pl.BlockSpec((tb, ts, H), lambda i, j: (i, j, 0)),
        compiler_params=pltpu.CompilerParams(
            dimension_semantics=_dim_semantics(2),
            vmem_limit_bytes=vmem_limit),
    )(x, pos_lin, gamma.reshape(1, H), beta.reshape(1, H))


# ---------------------------------------------------------------------------
# Kernel 2: BERTClass head = pooler (tanh o Linear) -> Dropout(eval=id) -> classifier
#   h_ref  : (TB, H)  bf16 activation row-tile
#   wp_ref : (H, H)   bf16 pooler weight  (out, in) -- contracted on axis 1
#   wc_ref : (Lp, H)  bf16 classifier weight, padded to Lp=ceil(L/128)*128 lanes
#   biases : f32
# ---------------------------------------------------------------------------
def head_kernel(h_ref, wp_ref, bp_ref, wc_ref, bc_ref, o_ref):
    # bf16 MXU operands, f32 accumulation; contract on the (out,in) weights' "in"
    # axis directly (no wrapper-side transposes, H stays lane-dense).
    pooled = jnp.tanh(
        jax.lax.dot_general(h_ref[...], wp_ref[...],
                            (((1,), (1,)), ((), ())),
                            preferred_element_type=jnp.float32)
        + bp_ref[...])
    # TODO(synk): nn.Dropout(dropout_rate) omitted (eval/inference -> identity).
    logits = jax.lax.dot_general(pooled.astype(wc_ref.dtype), wc_ref[...],
                                 (((1,), (1,)), ((), ())),
                                 preferred_element_type=jnp.float32) + bc_ref[...]
    o_ref[...] = logits.astype(o_ref.dtype)


def bert_class_head_forward(h_cls, w_pool, b_pool, w_cls, b_cls):
    """h_cls: (B, H) [CLS] hidden states; w_pool: (H, H) (out,in);
    w_cls: (L, H) (out,in). Returns (B, L) f32 logits."""
    B, H = h_cls.shape
    L = w_cls.shape[0]
    Lp = ((L + 127) // 128) * 128                     # lane-dense classifier output
    w_cls_p = jnp.zeros((Lp, H), w_cls.dtype).at[:L].set(w_cls)
    b_cls_p = jnp.zeros((Lp,), b_cls.dtype).at[:L].set(b_cls)

    # bf16 MXU operands (accumulation stays f32 inside the kernel).
    h_bf = h_cls.astype(jnp.bfloat16)
    wp_bf = w_pool.astype(jnp.bfloat16)
    wc_bf = w_cls_p.astype(jnp.bfloat16)

    tb = B if B <= 256 else 256                       # row tile (weights stay resident)
    grid = (pl.cdiv(B, tb),)

    logits_p = pl.pallas_call(
        head_kernel,
        out_shape=jax.ShapeDtypeStruct((B, Lp), jnp.float32),
        grid=grid,
        in_specs=[
            pl.BlockSpec((tb, H), lambda i: (i, 0)),   # activation row-tile
            pl.BlockSpec((H, H), lambda i: (0, 0)),    # pooler weight (resident)
            pl.BlockSpec((1, H), lambda i: (0, 0)),    # pooler bias
            pl.BlockSpec((Lp, H), lambda i: (0, 0)),   # classifier weight (resident)
            pl.BlockSpec((1, Lp), lambda i: (0, 0)),   # classifier bias (padded)
        ],
        out_specs=pl.BlockSpec((tb, Lp), lambda i: (i, 0)),
        compiler_params=pltpu.CompilerParams(
            dimension_semantics=_dim_semantics(1)),
    )(h_bf, wp_bf, b_pool.reshape(1, H), wc_bf, b_cls_p.reshape(1, Lp))
    return logits_p[:, :L]


if __name__ == "__main__":
    B, S, H, MAX_LEN, NUM_LABELS = 4, 8, 128, 16, 8   # small TPU-friendly shapes

    key = jax.random.PRNGKey(0)
    kx, ke, kw, kb, kp, kc = jax.random.split(key, 6)

    # Deterministic synthetic parameters (shapes follow the modules' __init__):
    x = jax.random.normal(kx, (B, S, H), jnp.float32).astype(jnp.bfloat16)  # embeddings (bf16 I/O)
    pos_table = jax.random.normal(ke, (MAX_LEN, H), jnp.float32)            # Embedding.weight
    w = jax.random.normal(kw, (H, H), jnp.float32) * 0.02                   # Linear.weight (out, in)
    b = jax.random.normal(kb, (H,), jnp.float32) * 0.02                     # Linear.bias
    gamma = jnp.ones((H,), jnp.float32)                                     # LayerNorm.weight
    beta = jnp.zeros((H,), jnp.float32)                                     # LayerNorm.bias

    w_pool = jax.random.normal(kp, (H, H), jnp.float32) * 0.02              # BERT pooler Linear
    b_pool = jnp.zeros((H,), jnp.float32)
    w_cls = jax.random.normal(kc, (NUM_LABELS, H), jnp.float32) * 0.02      # classifier (out, in)
    b_cls = jnp.zeros((NUM_LABELS,), jnp.float32)

    emb = positional_embedding_forward(x, pos_table, w, b, gamma, beta)
    h_cls = emb[:, 0, :]                      # stand-in for the encoder's [CLS] states
    logits = bert_class_head_forward(h_cls, w_pool, b_pool, w_cls, b_cls)
    logits = jax.block_until_ready(logits)

    # Pure-JAX references (same math, eval mode).
    def _bf32(a):      # simulate bf16 MXU operand rounding
        return a.astype(jnp.bfloat16).astype(jnp.float32)

    x32 = x.astype(jnp.float32)
    pos = jnp.tanh(pos_table[:S] @ w.T + b)
    e = x32 + pos[None]
    mean = e.mean(-1, keepdims=True)
    var = ((e - mean) ** 2).mean(-1, keepdims=True)
    emb_ref = (e - mean) / jnp.sqrt(var + LN_EPS) * gamma + beta

    h32 = h_cls.astype(jnp.float32)
    pooled_ref = jnp.tanh(h32 @ _bf32(w_pool).T + b_pool)
    logits_ref = _bf32(pooled_ref) @ _bf32(w_cls).T + b_cls

    assert emb.shape == (B, S, H) and emb.dtype == jnp.bfloat16
    assert logits.shape == (B, NUM_LABELS) and logits.dtype == jnp.float32
    assert jnp.allclose(emb.astype(jnp.float32), emb_ref, atol=5e-2, rtol=5e-2)
    assert jnp.allclose(logits, logits_ref, atol=1e-2, rtol=1e-2)
    print("KERNEL_OK")
</pallas_src>

<mosaic_0001>
module attributes {stable_mosaic.version = 11 : i64} {
  func.func @embed_ln_kernel(%arg0: i32, %arg1: i32, %arg2: memref<4x8x128xbf16, #tpu.memory_space<vmem>>, %arg3: memref<8x128xf32, #tpu.memory_space<vmem>>, %arg4: memref<1x128xf32, #tpu.memory_space<vmem>>, %arg5: memref<1x128xf32, #tpu.memory_space<vmem>>, %arg6: memref<4x8x128xbf16, #tpu.memory_space<vmem>>) attributes {dimension_semantics = [#tpu.dimension_semantics<parallel>, #tpu.dimension_semantics<parallel>], iteration_bounds = array<i64: 1, 1>, scalar_prefetch = 0 : i64, scratch_operands = 0 : i64, tpu.core_type = #tpu.core_type<tc>, window_params = [{transform_indices = @transform_0, window_bounds = array<i64: 4, 8, 128>}, {transform_indices = @transform_1, window_bounds = array<i64: 8, 128>}, {pipeline_mode = #tpu.pipeline_mode<synchronous>, transform_indices = @transform_2, window_bounds = array<i64: 1, 128>}, {pipeline_mode = #tpu.pipeline_mode<synchronous>, transform_indices = @transform_3, window_bounds = array<i64: 1, 128>}, {transform_indices = @transform_4, window_bounds = array<i64: 4, 8, 128>}]} {
    %c0 = arith.constant 0 : index
    %c0_0 = arith.constant 0 : index
    %c0_1 = arith.constant 0 : index
    %0 = vector.load %arg2[%c0, %c0_0, %c0_1] : memref<4x8x128xbf16, #tpu.memory_space<vmem>>, vector<4x8x128xbf16>
    %1 = arith.extf %0 : vector<4x8x128xbf16> to vector<4x8x128xf32>
    %c0_2 = arith.constant 0 : index
    %c0_3 = arith.constant 0 : index
    %2 = vector.load %arg3[%c0_2, %c0_3] : memref<8x128xf32, #tpu.memory_space<vmem>>, vector<8x128xf32>
    %3 = vector.shape_cast %2 : vector<8x128xf32> to vector<1x8x128xf32>
    %4 = vector.broadcast %3 : vector<1x8x128xf32> to vector<4x8x128xf32>
    %5 = arith.addf %1, %4 : vector<4x8x128xf32>
    %cst = arith.constant dense<0.000000e+00> : vector<4x8xf32>
    %6 = vector.multi_reduction <add>, %5, %cst [2] : vector<4x8x128xf32> to vector<4x8xf32>
    %7 = vector.shape_cast %6 : vector<4x8xf32> to vector<4x8x1xf32>
    %cst_4 = arith.constant 1.280000e+02 : f32
    %8 = vector.broadcast %cst_4 : f32 to vector<4x8x1xf32>
    %9 = arith.divf %7, %8 : vector<4x8x1xf32>
    %10 = arith.mulf %5, %5 : vector<4x8x128xf32>
    %cst_5 = arith.constant dense<0.000000e+00> : vector<4x8xf32>
    %11 = vector.multi_reduction <add>, %10, %cst_5 [2] : vector<4x8x128xf32> to vector<4x8xf32>
    %12 = vector.shape_cast %11 : vector<4x8xf32> to vector<4x8x1xf32>
    %cst_6 = arith.constant 1.280000e+02 : f32
    %13 = vector.broadcast %cst_6 : f32 to vector<4x8x1xf32>
    %14 = arith.divf %12, %13 : vector<4x8x1xf32>
    %15 = arith.mulf %9, %9 : vector<4x8x1xf32>
    %16 = arith.subf %14, %15 : vector<4x8x1xf32>
    %cst_7 = arith.constant 0.000000e+00 : f32
    %17 = vector.broadcast %cst_7 : f32 to vector<4x8x1xf32>
    %18 = arith.maximumf %16, %17 : vector<4x8x1xf32>
    %19 = vector.broadcast %9 : vector<4x8x1xf32> to vector<4x8x128xf32>
    %20 = arith.subf %5, %19 : vector<4x8x128xf32>
    %cst_8 = arith.constant 9.99999974E-6 : f32
    %21 = vector.broadcast %cst_8 : f32 to vector<4x8x1xf32>
    %22 = arith.addf %18, %21 : vector<4x8x1xf32>
    %23 = math.rsqrt %22 : vector<4x8x1xf32>
    %24 = vector.broadcast %23 : vector<4x8x1xf32> to vector<4x8x128xf32>
    %25 = arith.mulf %20, %24 : vector<4x8x128xf32>
    %c0_9 = arith.constant 0 : index
    %c0_10 = arith.constant 0 : index
    %26 = vector.load %arg4[%c0_9, %c0_10] : memref<1x128xf32, #tpu.memory_space<vmem>>, vector<1x128xf32>
    %27 = vector.shape_cast %26 : vector<1x128xf32> to vector<1x1x128xf32>
    %28 = vector.broadcast %27 : vector<1x1x128xf32> to vector<4x8x128xf32>
    %29 = arith.mulf %25, %28 : vector<4x8x128xf32>
    %c0_11 = arith.constant 0 : index
    %c0_12 = arith.constant 0 : index
    %30 = vector.load %arg5[%c0_11, %c0_12] : memref<1x128xf32, #tpu.memory_space<vmem>>, vector<1x128xf32>
    %31 = vector.shape_cast %30 : vector<1x128xf32> to vector<1x1x128xf32>
    %32 = vector.broadcast %31 : vector<1x1x128xf32> to vector<4x8x128xf32>
    %33 = arith.addf %29, %32 : vector<4x8x128xf32>
    %34 = arith.truncf %33 : vector<4x8x128xf32> to vector<4x8x128xbf16>
    %c0_13 = arith.constant 0 : index
    %c0_14 = arith.constant 0 : index
    %c0_15 = arith.constant 0 : index
    %35 = vector.load %arg6[%c0_13, %c0_14, %c0_15] : memref<4x8x128xbf16, #tpu.memory_space<vmem>>, vector<4x8x128xbf16>
    tpu.vector_store %arg6[%c0_13, %c0_14, %c0_15], %34 {strides = array<i32>} : memref<4x8x128xbf16, #tpu.memory_space<vmem>>, vector<4x8x128xbf16>,
    return
  }
  func.func @transform_0(%arg0: i32, %arg1: i32) -> (i32, i32, i32) {
    %c0_i32 = arith.constant 0 : i32
    %c0_i32_0 = arith.constant 0 : i32
    return %arg0, %arg1, %c0_i32 : i32, i32, i32
  }
  func.func @transform_1(%arg0: i32, %arg1: i32) -> (i32, i32) {
    %c0_i32 = arith.constant 0 : i32
    %c0_i32_0 = arith.constant 0 : i32
    return %arg1, %c0_i32 : i32, i32
  }
  func.func @transform_2(%arg0: i32, %arg1: i32) -> (i32, i32) {
    %c0_i32 = arith.constant 0 : i32
    %c0_i32_0 = arith.constant 0 : i32
    %c0_i32_1 = arith.constant 0 : i32
    return %c0_i32, %c0_i32_0 : i32, i32
  }
  func.func @transform_3(%arg0: i32, %arg1: i32) -> (i32, i32) {
    %c0_i32 = arith.constant 0 : i32
    %c0_i32_0 = arith.constant 0 : i32
    %c0_i32_1 = arith.constant 0 : i32
    return %c0_i32, %c0_i32_0 : i32, i32
  }
  func.func @transform_4(%arg0: i32, %arg1: i32) -> (i32, i32, i32) {
    %c0_i32 = arith.constant 0 : i32
    %c0_i32_0 = arith.constant 0 : i32
    return %arg0, %arg1, %c0_i32 : i32, i32, i32
  }
}

</mosaic_0001>

<bundles_post_ra>
// kernel: tpu_custom_call.1
= control target key start
LH: loop header
LB: loop body
LE: loop exit
PB: predicated region body
PF: predicated region fallthrough
CT: control target
= control target key end

     0   :  { %9 = vsyncpa [#allocation3], 0  ;;  %s458_s0 = inlined_call_operand.hbm [shape: bf16[4,8,128], index: 0, kind: input, shape index: {}]   ;;  %s459_s1 = inlined_call_operand.hbm [shape: f32[8,128], index: 1, kind: input, shape index: {}]   ;;  %s460_s2 = inlined_call_operand.hbm [shape: f32[1,128], index: 2, kind: input, shape index: {}]   ;;  %s461_s3 = inlined_call_operand.hbm [shape: f32[1,128], index: 3, kind: input, shape index: {}]   ;;  %s462_s4 = inlined_call_operand.hbm [shape: bf16[4,8,128], index: 4, kind: output, shape index: {}]  }
   0x1   :  { %10 = vsyncpa [#allocation6], 0 }
   0x2   :  { %11 = vsyncpa [#allocation9], 0 }
   0x3   :  { %12 = vsyncpa [#allocation4], 0  ;;  %s341_s15 = smov [#allocation5]   ;;  %s342_s17 = smov [#allocation2]  }
   0x4   :  { %s31_s16 = sshll.u32 %s341_s15, 4  ;;  %s18_s18 = sshll.u32 %s342_s17, 4  ;;  %s32_s16 = int_to_ptr.vmem [resolvable:$true] %s31_s16  ;;  %s373_s18 = int_to_ptr.vmem [resolvable:$true] %s18_s18 }
   0x5   :  { %s223_s21 = scalar_lea.hbm %s459_s1, 128 }
   0x6   :  { %p224_p0 = scmp.ne.s32.totalorder %s459_s1, %s223_s21  ;;  %p227_p1 = scmp.lt.u32.totalorder %s223_s21, %s459_s1 }
   0x8   :  { %p229_p2 = pnand %p227_p1, %p224_p0 }
   0xa   :  { %232 = shalt.err (!%p229_p2)
}
   0xb   :  { %s233_s26 = scalar_lea.vmem %s32_s16, 128  ;;  %p238_p4 = scmp.lt.s32.totalorder %s32_s16, %s32_s16 }
   0xc   :  { %p234_p3 = scmp.ne.s32.totalorder %s32_s16, %s233_s26  ;;  %p239_p5 = scmp.lt.s32.totalorder %s233_s26, %s233_s26 }
   0xe   :  { %p240_p6 = por %p239_p5, %p238_p4 }
  0x10   :  { %p241_p7 = pnand %p240_p6, %p234_p3 }
  0x12   :  { %244 = shalt.err (!%p241_p7)
}
  0x13   :  { %34 = dma.hbm_to_vmem [thread:$0]  %s459_s1, 128, %s32_s16, [#allocation6]  }
  0x14   :  { %s245_s5 = scalar_lea.hbm %s458_s0, 256 }
  0x15   :  { %p246_p8 = scmp.ne.s32.totalorder %s458_s0, %s245_s5  ;;  %p249_p9 = scmp.lt.u32.totalorder %s245_s5, %s458_s0 }
  0x17   :  { %p251_p10 = pnand %p249_p9, %p246_p8 }
  0x19   :  { %254 = shalt.err (!%p251_p10)
}
  0x1a   :  { %s255_s10 = scalar_lea.vmem %s373_s18, 256  ;;  %p260_p12 = scmp.lt.s32.totalorder %s373_s18, %s373_s18 }
  0x1b   :  { %p256_p11 = scmp.ne.s32.totalorder %s373_s18, %s255_s10  ;;  %p261_p13 = scmp.lt.s32.totalorder %s255_s10, %s255_s10 }
  0x1d   :  { %p262_p0 = por %p261_p13, %p260_p12 }
  0x1f   :  { %p263_p1 = pnand %p262_p0, %p256_p11 }
  0x21   :  { %266 = shalt.err (!%p263_p1)
}
  0x22   :  { %s343_s1 = smov 64   ;;  %s344_s11 = smov 4  }
  0x23   :  { %24 = dma.hbm_to_vmem [thread:$0]  %s458_s0, 256, %s373_s18, [#allocation3], %s343_s1, %s343_s1, %s344_s11  }
  0x24   :  { %s345_s14 = smov [#allocation7]   ;;  %s346_s16 = smov [#allocation8]  }
  0x25   :  { %s41_s15 = sshll.u32 %s345_s14, 4  ;;  %s51_s17 = sshll.u32 %s346_s16, 4  ;;  %s42_s15 = int_to_ptr.vmem [resolvable:$true] %s41_s15  ;;  %s52_s17 = int_to_ptr.vmem [resolvable:$true] %s51_s17 }
  0x26   :  { %s267_s21 = scalar_lea.hbm %s460_s2, 16 }
  0x27   :  { %p268_p2 = scmp.ne.s32.totalorder %s460_s2, %s267_s21  ;;  %p271_p3 = scmp.lt.u32.totalorder %s267_s21, %s460_s2 }
  0x29   :  { %p273_p4 = pnand %p271_p3, %p268_p2 }
  0x2b   :  { %276 = shalt.err (!%p273_p4)
}
  0x2c   :  { %s277_s0 = scalar_lea.vmem %s42_s15, 16  ;;  %s281_s18 = scalar_lea.vmem %s42_s15, 32 }
  0x2d   :  { %p278_p5 = scmp.ne.s32.totalorder %s42_s15, %s277_s0  ;;  %p282_p6 = scmp.lt.s32.totalorder %s42_s15, %s42_s15 }
  0x2e   :  { %p283_p7 = scmp.lt.s32.totalorder %s281_s18, %s277_s0 }
  0x30   :  { %p284_p8 = por %p283_p7, %p282_p6 }
  0x32   :  { %p285_p9 = pnand %p284_p8, %p278_p5 }
  0x34   :  { %288 = shalt.err (!%p285_p9)
}
  0x35   :  { %44 = dma.hbm_to_vmem [thread:$0]  %s460_s2, 16, %s42_s15, [#allocation6]  }
  0x36   :  { %s289_s30 = scalar_lea.hbm %s461_s3, 16 }
  0x37   :  { %p290_p10 = scmp.ne.s32.totalorder %s461_s3, %s289_s30  ;;  %p293_p11 = scmp.lt.u32.totalorder %s289_s30, %s461_s3 }
  0x39   :  { %p295_p12 = pnand %p293_p11, %p290_p10 }
  0x3b   :  { %298 = shalt.err (!%p295_p12)
}
  0x3c   :  { %s299_s9 = scalar_lea.vmem %s52_s17, 16  ;;  %s303_s10 = scalar_lea.vmem %s52_s17, 32 }
  0x3d   :  { %p300_p13 = scmp.ne.s32.totalorder %s52_s17, %s299_s9  ;;  %p304_p0 = scmp.lt.s32.totalorder %s52_s17, %s52_s17 }
  0x3e   :  { %p305_p1 = scmp.lt.s32.totalorder %s303_s10, %s299_s9 }
  0x40   :  { %p306_p2 = por %p305_p1, %p304_p0 }
  0x42   :  { %p307_p3 = pnand %p306_p2, %p300_p13 }
  0x44   :  { %310 = shalt.err (!%p307_p3)
}
  0x45   :  { %54 = dma.hbm_to_vmem [thread:$0]  %s461_s3, 16, %s52_s17, [#allocation9]  }
  0x46   :  { %333 = dma.done.wait [#allocation3], 256  }
  0x47   :  { %334 = vsyncadd [#allocation3], 4294967040 }
  0x48   :  { %335 = dma.done.wait [#allocation6], 144  }
  0x49   :  { %336 = vsyncadd [#allocation6], 4294967152 }
  0x4a   :  { %337 = dma.done.wait [#allocation9], 16  }
  0x4b   :  { %338 = vsyncadd [#allocation9], 4294967280  ;;  %v206_v0 = vld [vmem:[#allocation2 + $0x8] sm:$0xff]   ;;  %v75_v1 = vld [vmem:[#allocation5] sm:$0xff]  ;;  %s347_s3 = smov [#allocation10]  }
  0x4c   :  { %v189_v2 = vld [vmem:[#allocation2] sm:$0xff]   ;;  %v194_v3 = vunpack.c.l.bf16 %v206_v0  ;;  %v195_v5 = vunpack.c.h.bf16 %v206_v0  ;;  %v186_v50 = vld [vmem:[#allocation7] ss:$0 sm:$0xff]  ;;  %v187_v54 = vld [vmem:[#allocation8] ss:$0 sm:$0xff]  ;;  %s172_s13 = sshll.u32 %s347_s3, 4  ;;  %s173_s13 = int_to_ptr.vmem [resolvable:$true] %s172_s13 }
  0x4d   :  { %v190_v4 = vunpack.c.l.bf16 %v189_v2  ;;  %v191_v6 = vunpack.c.h.bf16 %v189_v2  ;;  %s311_s14 = scalar_lea.vmem %s173_s13, 256  ;;  %p316_p5 = scmp.lt.s32.totalorder %s173_s13, %s173_s13 }
  0x4e   :  { %v431_v7 = vadd.f32 %v194_v3, %v75_v1  ;;  %v434_v9 = vadd.f32 %v195_v5, %v75_v1  ;;  %p312_p4 = scmp.ne.s32.totalorder %s173_s13, %s311_s14  ;;  %p317_p6 = scmp.lt.s32.totalorder %s311_s14, %s311_s14 }
  0x4f   :  { %v76_v8 = vadd.f32 %v190_v4, %v75_v1  ;;  %v77_v10 = vadd.f32 %v191_v6, %v75_v1 }
  0x50   :  { %84 = vadd.xlane.f32.xlu1 %v431_v7  ;;  %v96_v13 = vmul.f32 %v434_v9, %v434_v9  ;;  %v95_v14 = vmul.f32 %v431_v7, %v431_v7  ;;  %p318_p7 = por %p317_p6, %p316_p5 }
  0x51   :  { %80 = vadd.xlane.f32.xlu0 %v76_v8  ;;  %v94_v11 = vmul.f32 %v77_v10, %v77_v10  ;;  %v93_v12 = vmul.f32 %v76_v8, %v76_v8 }
  0x52   :  { %p319_p8 = pnand %p318_p7, %p312_p4 }
  0x54   :  { %86 = vadd.xlane.f32.xlu1 %v434_v9 }
  0x55   :  { %82 = vadd.xlane.f32.xlu0 %v77_v10 }
  0x58   :  { %99 = vadd.xlane.f32.xlu1 %v94_v11 }
  0x59   :  { %97 = vadd.xlane.f32.xlu0 %v93_v12 }
  0x5c   :  { %103 = vadd.xlane.f32.xlu1 %v96_v13 }
  0x5d   :  { %101 = vadd.xlane.f32.xlu0 %v95_v14 }
  0xdd   :  { %v85_v15 = vpop.xlane.xlu1 %84 }
  0xde   :  { %v81_v16 = vpop.xlane.xlu0 %80  ;;  %v91_v21 = vmul.f32 0.0078125, %v85_v15 }
  0xdf   :  { %v89_v19 = vmul.f32 0.0078125, %v81_v16 }
  0xe0   :  { %v111_v31 = vmul.f32 %v91_v21, %v91_v21  ;;  %v123_v58 = vsub.f32 %v431_v7, %v91_v21 }
  0xe1   :  { %v87_v17 = vpop.xlane.xlu1 %86  ;;  %v109_v25 = vmul.f32 %v89_v19, %v89_v19  ;;  %v121_v49 = vsub.f32 %v76_v8, %v89_v19 }
  0xe2   :  { %v83_v18 = vpop.xlane.xlu0 %82  ;;  %v92_v22 = vmul.f32 0.0078125, %v87_v17 }
  0xe3   :  { %v90_v20 = vmul.f32 0.0078125, %v83_v18 }
  0xe4   :  { %v112_v32 = vmul.f32 %v92_v22, %v92_v22  ;;  %v124_v55 = vsub.f32 %v434_v9, %v92_v22 }
  0xe5   :  { %v100_v23 = vpop.xlane.xlu1 %99  ;;  %v110_v26 = vmul.f32 %v90_v20, %v90_v20  ;;  %v122_v47 = vsub.f32 %v77_v10, %v90_v20 }
  0xe6   :  { %v98_v24 = vpop.xlane.xlu0 %97  ;;  %v106_v27 = vmul.f32 0.0078125, %v100_v23 }
  0xe7   :  { %v105_v28 = vmul.f32 0.0078125, %v98_v24 }
  0xe8   :  { %v114_v29 = vsub.f32 %v106_v27, %v110_v26 }
  0xe9   :  { %v113_v30 = vsub.f32 %v105_v28, %v109_v25  ;;  %v104_v33 = vpop.xlane.xlu1 %103 }
  0xea   :  { %v102_v34 = vpop.xlane.xlu0 %101  ;;  %v118_v35 = vmax.f32 %v114_v29, 0.0  ;;  %v108_v37 = vmul.f32 0.0078125, %v104_v33 }
  0xeb   :  { %v117_v36 = vmax.f32 %v113_v30, 0.0  ;;  %v107_v38 = vmul.f32 0.0078125, %v102_v34 }
  0xec   :  { %v126_v39 = vadd.f32 1e-05, %v118_v35  ;;  %v116_v41 = vsub.f32 %v108_v37, %v112_v32 }
  0xed   :  { %v125_v40 = vadd.f32 1e-05, %v117_v36  ;;  %v115_v42 = vsub.f32 %v107_v38, %v111_v31 }
  0xee   :  { %215 = vrsqrt.f32 %v126_v39  ;;  %v120_v43 = vmax.f32 %v116_v41, 0.0 }
  0xef   :  { %v119_v44 = vmax.f32 %v115_v42, 0.0  ;;  %217 = vrsqrt.f32 %v125_v40 }
  0xf0   :  { %v128_v45 = vadd.f32 1e-05, %v120_v43 }
  0xf1   :  { %v127_v46 = vadd.f32 1e-05, %v119_v44 }
  0xf2   :  { %219 = vrsqrt.f32 %v128_v45 }
  0xf3   :  { %221 = vrsqrt.f32 %v127_v46 }
  0xf8   :  { %v216_v48 = vpop.eup %215 }
  0xf9   :  { %v218_v51 = vpop.eup %217  ;;  %v134_v52 = vmul.f32 %v216_v48, %v122_v47 }
  0xfa   :  { %v133_v53 = vmul.f32 %v218_v51, %v121_v49 }
  0xfb   :  { %v145_v56 = vmul.f32 %v186_v50, %v134_v52 }
  0xfc   :  { %v220_v57 = vpop.eup %219  ;;  %v144_v59 = vmul.f32 %v186_v50, %v133_v53 }
  0xfd   :  { %v222_v60 = vpop.eup %221  ;;  %v136_v61 = vmul.f32 %v220_v57, %v124_v55  ;;  %v156_v62 = vadd.f32 %v187_v54, %v145_v56 }
  0xfe   :  { %v135_v63 = vmul.f32 %v222_v60, %v123_v58  ;;  %v155_v0 = vadd.f32 %v187_v54, %v144_v59 }
  0xff   :  { %v147_v1 = vmul.f32 %v186_v50, %v136_v61 }
 0x100   :  { %v146_v2 = vmul.f32 %v186_v50, %v135_v63  ;;  %v199_v3 = vpack.c.bf16 %v156_v62, %v155_v0 }
 0x101   :  { %v158_v4 = vadd.f32 %v187_v54, %v147_v1 }
 0x102   :  { %v157_v5 = vadd.f32 %v187_v54, %v146_v2  ;;  %200 = vst [vmem:[#allocation10] sm:$0xff] %v199_v3  }
 0x104   :  { %v204_v6 = vpack.c.bf16 %v158_v4, %v157_v5 }
 0x106   :  { %207 = vst [vmem:[#allocation10 + $0x8] sm:$0xff] %v204_v6  }
 0x107   :  { %322 = shalt.err (!%p319_p8)
}
 0x108   :  { %s323_s17 = scalar_lea.hbm %s462_s4, 256 }
 0x109   :  { %p324_p9 = scmp.ne.s32.totalorder %s462_s4, %s323_s17  ;;  %p327_p10 = scmp.lt.u32.totalorder %s323_s17, %s462_s4 }
 0x10b   :  { %p329_p11 = pnand %p327_p10, %p324_p9 }
 0x10d   :  { %332 = shalt.err (!%p329_p11)
}
 0x10e   :  { %178 = dma.vmem_to_hbm [thread:$0]  %s173_s13, 256, %s462_s4, [#allocation4], %s343_s1, %s343_s1, %s344_s11  }
 0x10f   :  { %339 = dma.done.wait [#allocation4], 256  }
 0x110   :  { %340 = vsyncadd [#allocation4], 4294967040 }
 0x111   :  { %182 = vsyncpa [#allocation3], 1 }
 0x112   :  { %183 = vsyncpa [#allocation6], 1 }
 0x113   :  { %184 = vsyncpa [#allocation9], 1 }
 0x114   :  { %185 = vsyncpa [#allocation4], 1 }

</bundles_post_ra>
